<compile_context>
chip_gen: v7x
topology: tpu7x:2x2x1
jax: 0.10.0
libtpu: 0.0.40
codegen_flags: <defaults>
</compile_context>

<pallas_src>
import math
from functools import partial

import jax
import jax.numpy as jnp
from jax.experimental import pallas as pl
from jax.experimental.pallas import tpu as pltpu

_NEG_LARGE = -1e30  # finite "-inf": masked-column logit / running-max init


def _round_up(x, m):
    return ((x + m - 1) // m) * m


def _cdiv(a, b):
    return (a + b - 1) // b


def _generator_kernel(x_ref, w_ref, b_ref, o_ref, m_ref, l_ref, *cache,
                      vocab, tn):
    """Two-pass (over the vocab grid axis) linear + log_softmax.

    Grid = (row_tiles, 2, vocab_tiles); grid axis 1 is the phase:
      phase 0: accumulate running max / running sum-exp per row (online LSE);
               optionally cache the f32 logits tiles in VMEM.
      phase 1: write `logits - lse` (from the cache, or recomputed).

    x_ref: (TM, D)   bf16, resident across phase/vocab steps (same block index)
    w_ref: (TN, D)   bf16, streamed per vocab tile (PyTorch (V, D) layout)
    b_ref: (1, TN)   f32
    o_ref: (TM, TN)  out_dtype
    m_ref, l_ref: (TM, 1) f32 scratch; m_ref holds the final LSE in phase 1.
    cache (optional): (NJ, TM, TN) f32 logits cache.
    """
    cache_ref = cache[0] if cache else None
    phase = pl.program_id(1)
    j = pl.program_id(2)
    nj = pl.num_programs(2)

    def _logits():
        # (TM, TN) tile on the MXU: contract D of x with D of w ((V, D) layout),
        # bf16 operands, f32 accumulation.
        s = jax.lax.dot_general(
            x_ref[...],
            w_ref[...],
            dimension_numbers=(((1,), (1,)), ((), ())),
            preferred_element_type=jnp.float32,
        ) + b_ref[...]
        if vocab % tn != 0:
            # Ragged last vocab tile: columns >= vocab hold undefined (OOB)
            # weight/bias data -> force them to a huge negative logit so they
            # never contribute to the LSE and are dropped on writeback.
            col = j * tn + jax.lax.broadcasted_iota(jnp.int32, s.shape, 1)
            s = jnp.where(col < vocab, s, _NEG_LARGE)
        return s

    @pl.when(jnp.logical_and(phase == 0, j == 0))
    def _():
        m_ref[...] = jnp.full(m_ref.shape, _NEG_LARGE, dtype=m_ref.dtype)
        l_ref[...] = jnp.zeros(l_ref.shape, dtype=l_ref.dtype)

    @pl.when(phase == 0)
    def _():
        s = _logits()
        if cache_ref is not None:
            cache_ref[j] = s
        m_prev = m_ref[...]
        m_new = jnp.maximum(m_prev, jnp.max(s, axis=-1, keepdims=True))
        l_ref[...] = l_ref[...] * jnp.exp(m_prev - m_new) + jnp.sum(
            jnp.exp(s - m_new), axis=-1, keepdims=True)
        m_ref[...] = m_new

        @pl.when(j == nj - 1)
        def _():
            # Collapse (max, sum) into the final log-sum-exp for phase 1.
            m_ref[...] = m_ref[...] + jnp.log(l_ref[...])

    @pl.when(phase == 1)
    def _():
        if cache_ref is not None:
            s = cache_ref[j]          # reuse phase-0 logits: no MXU recompute
        else:
            s = _logits()             # fallback: recompute (large vocab*tm)
        o_ref[...] = (s - m_ref[...]).astype(o_ref.dtype)


def generator_forward(x, weight, bias, *,
                      tile_rows=512, tile_vocab=2048,
                      out_dtype=jnp.float32,
                      vmem_budget_bytes=24 * 1024 * 1024,
                      logits_cache_bytes=12 * 1024 * 1024):
    """x: (B, S, d_model); weight: (vocab, d_model) (PyTorch layout); bias: (vocab,).

    Returns log-probs of shape (B, S, vocab) in `out_dtype` (f32 by default,
    bf16 saves ~1/3 of HBM writeback on HBM-bound generations).
    """
    B, S, D = x.shape
    V = weight.shape[0]
    rows = B * S

    # --- tile selection -------------------------------------------------
    # Row tile: multiple of 8, large for weight-stream arithmetic intensity.
    tm = _round_up(min(max(tile_rows, 8), _round_up(rows, 8)), 8)
    # v7x megacore: keep >= 2 tiles on the "parallel" row axis when possible
    # so both TensorCores get work (no effect on single-TC v5e/v6e).
    if rows > 8 and _cdiv(rows, tm) < 2:
        tm = _round_up(_cdiv(rows, 2), 8)
    # Vocab tile: multiple of 128 (lane-dense output, large DMAs).
    tn = _round_up(min(max(tile_vocab, 128), _round_up(V, 128)), 128)

    def _working_set(tm_, tn_):
        return (2 * tm_ * D * 2        # x tile (bf16), double-buffered
                + 2 * tn_ * D * 2      # weight tile (bf16), double-buffered
                + 2 * tn_ * 4          # bias tile, double-buffered
                + 2 * tm_ * tn_ * 4    # output tile (f32), double-buffered
                + 2 * tm_ * 4 * 2)     # running max / sum-exp scratch

    # Shrink tiles (vocab first, then rows) until the double-buffered working
    # set fits a cross-generation VMEM budget (v5e scoped default is ~16 MiB,
    # v7x has only 64 MiB physical -> keep headroom for pipelining).
    while _working_set(tm, tn) > vmem_budget_bytes and tn > 512:
        tn = max(512, _round_up(tn // 2, 128))
    while _working_set(tm, tn) > vmem_budget_bytes and tm > 256:
        tm = max(256, _round_up(tm // 2, 8))

    rows_p = _round_up(rows, tm)
    nj = _cdiv(V, tn)

    # Cache phase-0 logits in VMEM when the per-row-tile slab is small enough:
    # removes the phase-1 matmul (2x MXU) and the phase-1 weight re-stream.
    cache_bytes = nj * tm * tn * 4
    use_cache = cache_bytes <= logits_cache_bytes

    # --- operands ---------------------------------------------------------
    # bf16 operands for the MXU; skip the cast if the caller already stores
    # the weight in bf16 (avoids a full V*D HBM round trip per call).
    x2 = x.reshape(rows, D)
    if x2.dtype != jnp.bfloat16:
        x2 = x2.astype(jnp.bfloat16)
    w = weight if weight.dtype == jnp.bfloat16 else weight.astype(jnp.bfloat16)
    b2 = bias.astype(jnp.float32).reshape(1, V)
    if rows_p != rows:
        x2 = jnp.pad(x2, ((0, rows_p - rows), (0, 0)))
    # NOTE: no weight/bias padding -- the ragged last vocab tile is masked
    # in-kernel, so every vocab tile contains at least one real column.

    # --- specs --------------------------------------------------------------
    if use_cache:
        # Phase 1 never touches the weight: pin its block index to 0 so the
        # weight is streamed ~once (nj + 1 tiles) per row tile instead of 2*nj.
        w_map = lambda i, p, j: ((1 - p) * j, 0)
    else:
        w_map = lambda i, p, j: (j, 0)

    in_specs = [
        pl.BlockSpec((tm, D), lambda i, p, j: (i, 0)),   # x row tile (resident)
        pl.BlockSpec((tn, D), w_map),                    # (V, D) weight tile
        pl.BlockSpec((1, tn), lambda i, p, j: (0, j)),   # bias tile
    ]
    # Phase 0 pins the output block at (i, 0); it is never flushed during
    # phase 0 because the block index does not change until phase 1, j=1 --
    # by which time phase 1, j=0 has already written the correct contents.
    # (Fragile w.r.t. revisit/flush semantics; validated against the pure-JAX
    # reference below.)
    out_specs = pl.BlockSpec((tm, tn), lambda i, p, j: (i, p * j))

    scratch_shapes = [
        pltpu.VMEM((tm, 1), jnp.float32),   # running max / final lse
        pltpu.VMEM((tm, 1), jnp.float32),   # running sum-exp
    ]
    if use_cache:
        scratch_shapes.append(pltpu.VMEM((nj, tm, tn), jnp.float32))

    vmem_limit = _working_set(tm, tn) + (cache_bytes if use_cache else 0) + (8 << 20)
    vmem_limit = int(min(max(vmem_limit, 32 << 20), 48 << 20))

    grid = (rows_p // tm, 2, nj)

    out = pl.pallas_call(
        partial(_generator_kernel, vocab=V, tn=tn),
        out_shape=jax.ShapeDtypeStruct((rows_p, V), out_dtype),
        grid_spec=pltpu.PrefetchScalarGridSpec(
            num_scalar_prefetch=0,
            grid=grid,
            in_specs=in_specs,
            out_specs=out_specs,
            scratch_shapes=scratch_shapes,
        ),
        compiler_params=pltpu.CompilerParams(
            dimension_semantics=("parallel", "arbitrary", "arbitrary"),
            vmem_limit_bytes=vmem_limit,
        ),
    )(x2, w, b2)

    if rows_p != rows:
        out = out[:rows]
    return out.reshape(B, S, V)


def init_generator_params(key, d_model, vocab):
    """Deterministic xavier_uniform_ weight + zero bias (like the PyTorch init)."""
    bound = math.sqrt(6.0 / (d_model + vocab))
    weight = jax.random.uniform(
        key, (vocab, d_model), minval=-bound, maxval=bound, dtype=jnp.float32
    )
    bias = jnp.zeros((vocab,), dtype=jnp.float32)
    return weight, bias


def _reference(x, weight, bias):
    # Pure-JAX reference using the same bf16-operand / f32-accumulate math.
    logits = jnp.einsum(
        "bsd,vd->bsv",
        x.astype(jnp.bfloat16),
        weight.astype(jnp.bfloat16),
        preferred_element_type=jnp.float32,
    ) + bias.astype(jnp.float32)
    return jax.nn.log_softmax(logits, axis=-1)


if __name__ == "__main__":
    key = jax.random.PRNGKey(0)
    k_x1, k_w1, k_x2, k_w2 = jax.random.split(key, 4)

    # Case 1: defaults; non-aligned rows/vocab exercise row padding, the
    # ragged-vocab-tile mask, the >=2-row-tile split, and the logits cache.
    batch, seq, d_model, vocab = 3, 5, 32, 50
    x = jax.random.normal(k_x1, (batch, seq, d_model), dtype=jnp.float32)
    weight, bias = init_generator_params(k_w1, d_model, vocab)
    out = jax.block_until_ready(generator_forward(x, weight, bias))
    ref = _reference(x, weight, bias)
    assert out.shape == (batch, seq, vocab)
    assert bool(jnp.all(jnp.isfinite(out)))
    assert jnp.allclose(out, ref, atol=2e-3, rtol=2e-3)

    # Case 2: small tiles force multiple row tiles AND multiple vocab tiles
    # (online two-pass LSE across vocab tiles, cached-logits phase 1).
    batch, seq, d_model, vocab = 2, 8, 32, 200
    x = jax.random.normal(k_x2, (batch, seq, d_model), dtype=jnp.float32)
    weight, bias = init_generator_params(k_w2, d_model, vocab)
    out = jax.block_until_ready(
        generator_forward(x, weight, bias, tile_rows=8, tile_vocab=128))
    ref = _reference(x, weight, bias)
    assert out.shape == (batch, seq, vocab)
    assert bool(jnp.all(jnp.isfinite(out)))
    assert jnp.allclose(out, ref, atol=2e-3, rtol=2e-3)

    # Case 3: same shapes with the logits cache disabled, exercising the
    # recompute (large-vocab) fallback path.
    out = jax.block_until_ready(
        generator_forward(x, weight, bias, tile_rows=8, tile_vocab=128,
                          logits_cache_bytes=0))
    assert out.shape == (batch, seq, vocab)
    assert bool(jnp.all(jnp.isfinite(out)))
    assert jnp.allclose(out, ref, atol=2e-3, rtol=2e-3)

    print("KERNEL_OK")
</pallas_src>

<mosaic_0001>
module attributes {stable_mosaic.version = 11 : i64} {
  func.func @_generator_kernel(%arg0: i32, %arg1: i32, %arg2: i32, %arg3: memref<8x32xbf16, #tpu.memory_space<vmem>>, %arg4: memref<128x32xbf16, #tpu.memory_space<vmem>>, %arg5: memref<1x128xf32, #tpu.memory_space<vmem>>, %arg6: memref<8x128xf32, #tpu.memory_space<vmem>>, %arg7: memref<8x1xf32, #tpu.memory_space<vmem>>, %arg8: memref<8x1xf32, #tpu.memory_space<vmem>>, %arg9: memref<1x8x128xf32, #tpu.memory_space<vmem>>) attributes {dimension_semantics = [#tpu.dimension_semantics<parallel>, #tpu.dimension_semantics<arbitrary>, #tpu.dimension_semantics<arbitrary>], iteration_bounds = array<i64: 2, 2, 1>, scalar_prefetch = 0 : i64, scratch_operands = 3 : i64, tpu.core_type = #tpu.core_type<tc>, window_params = [{transform_indices = @transform_0, window_bounds = array<i64: 8, 32>}, {transform_indices = @transform_1, window_bounds = array<i64: 128, 32>}, {transform_indices = @transform_2, window_bounds = array<i64: 1, 128>}, {transform_indices = @transform_3, window_bounds = array<i64: 8, 128>}]} {
    %c0_i32 = arith.constant 0 : i32
    %0 = arith.cmpi eq, %arg1, %c0_i32 : i32
    %c0_i32_0 = arith.constant 0 : i32
    %1 = arith.cmpi eq, %arg2, %c0_i32_0 : i32
    %2 = arith.andi %0, %1 : i1
    %3 = arith.extui %2 : i1 to i32
    %c0_i32_1 = arith.constant 0 : i32
    %4 = arith.cmpi ne, %3, %c0_i32_1 : i32
    scf.if %4 {
      %cst = arith.constant -1.000000e+30 : f32
      %11 = vector.broadcast %cst : f32 to vector<8x1xf32>
      %c0 = arith.constant 0 : index
      %c0_5 = arith.constant 0 : index
      %12 = vector.load %arg7[%c0, %c0_5] : memref<8x1xf32, #tpu.memory_space<vmem>>, vector<8x1xf32>
      tpu.vector_store %arg7[%c0, %c0_5], %11 {strides = array<i32>} : memref<8x1xf32, #tpu.memory_space<vmem>>, vector<8x1xf32>,
      %cst_6 = arith.constant 0.000000e+00 : f32
      %13 = vector.broadcast %cst_6 : f32 to vector<8x1xf32>
      %c0_7 = arith.constant 0 : index
      %c0_8 = arith.constant 0 : index
      %14 = vector.load %arg8[%c0_7, %c0_8] : memref<8x1xf32, #tpu.memory_space<vmem>>, vector<8x1xf32>
      tpu.vector_store %arg8[%c0_7, %c0_8], %13 {strides = array<i32>} : memref<8x1xf32, #tpu.memory_space<vmem>>, vector<8x1xf32>,
    } else {
    }
    %c0_i32_2 = arith.constant 0 : i32
    %5 = arith.cmpi eq, %arg1, %c0_i32_2 : i32
    %6 = arith.extui %5 : i1 to i32
    %c0_i32_3 = arith.constant 0 : i32
    %7 = arith.cmpi ne, %6, %c0_i32_3 : i32
    scf.if %7 {
      %c0 = arith.constant 0 : index
      %c0_5 = arith.constant 0 : index
      %11 = vector.load %arg3[%c0, %c0_5] : memref<8x32xbf16, #tpu.memory_space<vmem>>, vector<8x32xbf16>
      %c0_6 = arith.constant 0 : index
      %c0_7 = arith.constant 0 : index
      %12 = vector.load %arg4[%c0_6, %c0_7] : memref<128x32xbf16, #tpu.memory_space<vmem>>, vector<128x32xbf16>
      %cst = arith.constant dense<0.000000e+00> : vector<8x128xf32>
      %13 = tpu.matmul %11, %12, %cst {dimension_numbers = #tpu.dot_dimension_numbers<[1], [1], [0], [0], [0, 0, 1, 0], [], []>} : vector<8x32xbf16>, vector<128x32xbf16>, vector<8x128xf32> -> vector<8x128xf32>
      %c0_8 = arith.constant 0 : index
      %c0_9 = arith.constant 0 : index
      %14 = vector.load %arg5[%c0_8, %c0_9] : memref<1x128xf32, #tpu.memory_space<vmem>>, vector<1x128xf32>
      %15 = vector.broadcast %14 : vector<1x128xf32> to vector<8x128xf32>
      %16 = arith.addf %13, %15 : vector<8x128xf32>
      %c128_i32 = arith.constant 128 : i32
      %17 = arith.muli %arg2, %c128_i32 : i32
      %18 = tpu.iota {dimensions = array<i32: 1>} : vector<8x128xi32>
      %19 = vector.broadcast %17 : i32 to vector<8x128xi32>
      %20 = arith.addi %19, %18 : vector<8x128xi32>
      %c50_i32 = arith.constant 50 : i32
      %21 = vector.broadcast %c50_i32 : i32 to vector<8x128xi32>
      %22 = arith.cmpi slt, %20, %21 : vector<8x128xi32>
      %cst_10 = arith.constant -1.000000e+30 : f32
      %23 = vector.broadcast %cst_10 : f32 to vector<8x128xf32>
      %24 = arith.select %22, %16, %23 : vector<8x128xi1>, vector<8x128xf32>
      %25 = arith.index_cast %arg2 : i32 to index
      %c0_11 = arith.constant 0 : index
      %c0_12 = arith.constant 0 : index
      %26 = vector.load %arg9[%25, %c0_11, %c0_12] : memref<1x8x128xf32, #tpu.memory_space<vmem>>, vector<1x8x128xf32>
      %27 = vector.shape_cast %26 : vector<1x8x128xf32> to vector<8x128xf32>
      %28 = vector.shape_cast %24 : vector<8x128xf32> to vector<1x8x128xf32>
      tpu.vector_store %arg9[%25, %c0_11, %c0_12], %28 {strides = array<i32>} : memref<1x8x128xf32, #tpu.memory_space<vmem>>, vector<1x8x128xf32>,
      %c0_13 = arith.constant 0 : index
      %c0_14 = arith.constant 0 : index
      %29 = vector.load %arg7[%c0_13, %c0_14] : memref<8x1xf32, #tpu.memory_space<vmem>>, vector<8x1xf32>
      %cst_15 = arith.constant dense<0xFF800000> : vector<8xf32>
      %30 = vector.multi_reduction <maximumf>, %24, %cst_15 [1] : vector<8x128xf32> to vector<8xf32>
      %31 = vector.shape_cast %30 : vector<8xf32> to vector<8x1xf32>
      %32 = arith.maximumf %29, %31 : vector<8x1xf32>
      %c0_16 = arith.constant 0 : index
      %c0_17 = arith.constant 0 : index
      %33 = vector.load %arg8[%c0_16, %c0_17] : memref<8x1xf32, #tpu.memory_space<vmem>>, vector<8x1xf32>
      %34 = arith.subf %29, %32 : vector<8x1xf32>
      %35 = math.exp %34 : vector<8x1xf32>
      %36 = arith.mulf %33, %35 : vector<8x1xf32>
      %37 = vector.broadcast %32 : vector<8x1xf32> to vector<8x128xf32>
      %38 = arith.subf %24, %37 : vector<8x128xf32>
      %39 = math.exp %38 : vector<8x128xf32>
      %cst_18 = arith.constant dense<0.000000e+00> : vector<8xf32>
      %40 = vector.multi_reduction <add>, %39, %cst_18 [1] : vector<8x128xf32> to vector<8xf32>
      %41 = vector.shape_cast %40 : vector<8xf32> to vector<8x1xf32>
      %42 = arith.addf %36, %41 : vector<8x1xf32>
      %c0_19 = arith.constant 0 : index
      %c0_20 = arith.constant 0 : index
      %43 = vector.load %arg8[%c0_19, %c0_20] : memref<8x1xf32, #tpu.memory_space<vmem>>, vector<8x1xf32>
      tpu.vector_store %arg8[%c0_19, %c0_20], %42 {strides = array<i32>} : memref<8x1xf32, #tpu.memory_space<vmem>>, vector<8x1xf32>,
      %c0_21 = arith.constant 0 : index
      %c0_22 = arith.constant 0 : index
      %44 = vector.load %arg7[%c0_21, %c0_22] : memref<8x1xf32, #tpu.memory_space<vmem>>, vector<8x1xf32>
      tpu.vector_store %arg7[%c0_21, %c0_22], %32 {strides = array<i32>} : memref<8x1xf32, #tpu.memory_space<vmem>>, vector<8x1xf32>,
      %c0_i32_23 = arith.constant 0 : i32
      %45 = arith.cmpi eq, %arg2, %c0_i32_23 : i32
      %46 = arith.extui %45 : i1 to i32
      %c0_i32_24 = arith.constant 0 : i32
      %47 = arith.cmpi ne, %46, %c0_i32_24 : i32
      scf.if %47 {
        %c0_25 = arith.constant 0 : index
        %c0_26 = arith.constant 0 : index
        %48 = vector.load %arg7[%c0_25, %c0_26] : memref<8x1xf32, #tpu.memory_space<vmem>>, vector<8x1xf32>
        %c0_27 = arith.constant 0 : index
        %c0_28 = arith.constant 0 : index
        %49 = vector.load %arg8[%c0_27, %c0_28] : memref<8x1xf32, #tpu.memory_space<vmem>>, vector<8x1xf32>
        %50 = math.log %49 : vector<8x1xf32>
        %51 = arith.addf %48, %50 : vector<8x1xf32>
        %c0_29 = arith.constant 0 : index
        %c0_30 = arith.constant 0 : index
        %52 = vector.load %arg7[%c0_29, %c0_30] : memref<8x1xf32, #tpu.memory_space<vmem>>, vector<8x1xf32>
        tpu.vector_store %arg7[%c0_29, %c0_30], %51 {strides = array<i32>} : memref<8x1xf32, #tpu.memory_space<vmem>>, vector<8x1xf32>,
      } else {
      }
    } else {
    }
    %c1_i32 = arith.constant 1 : i32
    %8 = arith.cmpi eq, %arg1, %c1_i32 : i32
    %9 = arith.extui %8 : i1 to i32
    %c0_i32_4 = arith.constant 0 : i32
    %10 = arith.cmpi ne, %9, %c0_i32_4 : i32
    scf.if %10 {
      %11 = arith.index_cast %arg2 : i32 to index
      %c0 = arith.constant 0 : index
      %c0_5 = arith.constant 0 : index
      %12 = vector.load %arg9[%11, %c0, %c0_5] : memref<1x8x128xf32, #tpu.memory_space<vmem>>, vector<1x8x128xf32>
      %13 = vector.shape_cast %12 : vector<1x8x128xf32> to vector<8x128xf32>
      %c0_6 = arith.constant 0 : index
      %c0_7 = arith.constant 0 : index
      %14 = vector.load %arg7[%c0_6, %c0_7] : memref<8x1xf32, #tpu.memory_space<vmem>>, vector<8x1xf32>
      %15 = vector.broadcast %14 : vector<8x1xf32> to vector<8x128xf32>
      %16 = arith.subf %13, %15 : vector<8x128xf32>
      %c0_8 = arith.constant 0 : index
      %c0_9 = arith.constant 0 : index
      %17 = vector.load %arg6[%c0_8, %c0_9] : memref<8x128xf32, #tpu.memory_space<vmem>>, vector<8x128xf32>
      tpu.vector_store %arg6[%c0_8, %c0_9], %16 {strides = array<i32>} : memref<8x128xf32, #tpu.memory_space<vmem>>, vector<8x128xf32>,
    } else {
    }
    return
  }
  func.func @transform_0(%arg0: i32, %arg1: i32, %arg2: i32) -> (i32, i32) {
    %c0_i32 = arith.constant 0 : i32
    %c0_i32_0 = arith.constant 0 : i32
    return %arg0, %c0_i32 : i32, i32
  }
  func.func @transform_1(%arg0: i32, %arg1: i32, %arg2: i32) -> (i32, i32) {
    %c1_i32 = arith.constant 1 : i32
    %0 = arith.subi %c1_i32, %arg1 : i32
    %1 = arith.muli %0, %arg2 : i32
    %c0_i32 = arith.constant 0 : i32
    %c0_i32_0 = arith.constant 0 : i32
    return %1, %c0_i32 : i32, i32
  }
  func.func @transform_2(%arg0: i32, %arg1: i32, %arg2: i32) -> (i32, i32) {
    %c0_i32 = arith.constant 0 : i32
    %c0_i32_0 = arith.constant 0 : i32
    return %c0_i32, %arg2 : i32, i32
  }
  func.func @transform_3(%arg0: i32, %arg1: i32, %arg2: i32) -> (i32, i32) {
    %0 = arith.muli %arg1, %arg2 : i32
    %c0_i32 = arith.constant 0 : i32
    return %arg0, %0 : i32, i32
  }
}

</mosaic_0001>

<bundles_post_ra>
// kernel: tpu_custom_call.1
= control target key start
LH: loop header
LB: loop body
LE: loop exit
PB: predicated region body
PF: predicated region fallthrough
CT: control target
= control target key end

     0   :  { %8 = vsyncpa [#allocation6], 0  ;;  %s1024_s0 = inlined_call_operand.vmem [shape: bf16[16,32], index: 0, kind: input, shape index: {}]   ;;  %s1025_s1 = inlined_call_operand.vmem [shape: bf16[50,32], index: 1, kind: input, shape index: {}]   ;;  %s1026_s2 = inlined_call_operand.vmem [shape: f32[1,50], index: 2, kind: input, shape index: {}]   ;;  %s1027_s3 = inlined_call_operand.hbm [shape: f32[16,50], index: 3, kind: output, shape index: {}]  }
   0x1   :  { %10 = vsyncpa [#allocation6 + $0x1], 0  ;;  %s842_s12 = smov 0   ;;  %s844_s13 = smov 0  }
   0x2   :  { %s846_s14 = smov 0   ;;  %s848_s15 = smov 0  }
   0x3   :  { %s850_s16 = smov 0   ;;  %s852_s17 = smov 0  }
   0x4   :  { %s854_s18 = smov 0   ;;  %s856_s19 = smov 0  }
   0x5 LB: > { %s570_s20 = sadd.s32 4294967295, %s813_s19   ;;  %s571_s21 = sadd.s32 4294967294, %s813_s19   ;;  %s813_s19 = sphi %s856_s19, %s16_s19   ;;  %s809_s18 = sphi %s854_s18, %s1036_s18   ;;  %s805_s17 = sphi %s852_s17, %s1035_s17   ;;  %s801_s16 = sphi %s850_s16, %s1034_s16   ;;  %s797_s15 = sphi %s848_s15, %s1033_s15   ;;  %s793_s14 = sphi %s846_s14, %s1032_s14   ;;  %s789_s13 = sphi %s844_s13, %s1031_s13   ;;  %s785_s12 = sphi %s842_s12, %s1030_s12  }
   0x6   : > { %s31_s22 = sadd.s32 1, %s805_s17  ;;  %s35_s23 = sadd.s32 1, %s809_s18 }
   0x7   : > { %p33_p0 = scmp.ge.s32.totalorder %s31_s22, 2  ;;  %p138_p1 = scmp.ne.s32.totalorder %s793_s14, %s789_s13 }
   0x8   : > { %p139_p2 = scmp.eq.s32.totalorder %s570_s20, 3  ;;  %p144_p4 = scmp.ne.s32.totalorder %s789_s13, %s785_s12 }
   0x9   : > { %s1038_s22 = smov (%p33_p0, %s31_s22), 0  ;;  %s1040_s23 = smov (!%p33_p0, %s35_s23), %s809_s18 }
   0xa   : > { %p891_p3 = por %p139_p2, %p138_p1  ;;  %p37_p5 = scmp.ge.s32.totalorder %s1040_s23, 2 }
   0xb   : > { %p145_p6 = scmp.eq.s32.totalorder %s571_s21, 3  ;;  %p576_p7 = scmp.ge.s32.totalorder %s813_s19, 1 }
   0xc   : > { %p193_p8 = scmp.lt.s32.totalorder %s813_s19, 5  ;;  %s1042_s23 = smov (%p37_p5, %s1040_s23), 0 }
   0xd   : > { %p901_p9 = por %p145_p6, %p144_p4  ;;  %s123_s26 = ssub.s32 %s809_s18, %s1042_s23 }
   0xe   : > { %p194_p10 = pnand %p576_p7, %p193_p8  ;;  %s128_s27 = sadd.s32 1, %s793_s14 }
   0xf   : > { %p126_p11 = scmp.eq.s32.totalorder %s123_s26, 0  ;;  %s225_s29 = sand.u32 (!%p194_p10), 1, %s789_s13  }
  0x10   : > { %197 = sbr.rel (%p194_p10) target bundleno = 929 (0x3a1), region = 32  ;;  %p228_p12 = scmp.lt.s32.totalorder (!%p194_p10), %s801_s16, 1 }
  0x11   : > { %s909_s28 = scalar_select %p126_p11, %s793_s14, %s128_s27  }
  0x12   : > { %s915_s30 = sshll.u32 (!%p194_p10), %s225_s29, 3  ;;  %p251_p13 = scmp.eq.s32.totalorder (!%p194_p10), %s797_s15, 0 }
  0x13   : > { %s227_s9 = scalar_lea.vmem (!%p194_p10), [#allocation5], %s915_s30 }
  0x17   : > { %s229_s4 = scalar_select %p228_p12, %s801_s16, 1 }
  0x18   : > { %256 = sbr.rel (!%p251_p13) target bundleno = 31 (0x1f), region = 36  ;;  %vm257_vm0 = vcmask (%p251_p13), 7168   ;;  %v815_v0 = vmov (%p251_p13), -1e+30   ;;  %v816_v1 = vmov (%p251_p13), 0.0  }
  0x19   : > { %s578_s5 = sshll.u32 %s229_s4, 2  ;;  %258 = vst.msk [vmem:[#allocation2] sm:$0xff] (%p251_p13), %vm257_vm0, %v815_v0  ;;  %259 = vst.msk [vmem:[#allocation3] sm:$0xff] (%p251_p13), %vm257_vm0, %v816_v1 }
  0x1a   : > { %s922_s8 = scalar_lea.vmem %s1024_s0, %s578_s5 }
  0x1f PF: > { %p580_p0 = scmp.ne.s32.totalorder %s797_s15, 0 }
  0x20   : > { %v704_v2 = vld [vmem:[%s1025_s1] sm:$0xff] (!%p580_p0)   ;;  %v817_v3 = vmov (!%p580_p0), 0.0   ;;  %vm327_vm1 = vcmask (!%p580_p0), 261120   ;;  %v705_v5 = vld [vmem:[%s1025_s1 + $0x8] sm:$0xff] (!%p580_p0)   ;;  %vm818_vm2 = vmmov (!%p580_p0), 0   ;;  %v706_v7 = vld [vmem:[%s1025_s1 + $0x10] sm:$0xff] (!%p580_p0)   ;;  %v396_v20 = vlaneseq (!%p580_p0) }
  0x21   : > { %262 = sbr.rel (%p580_p0) target bundleno = 767 (0x2ff), region = 40  ;;  %606 = vmatprep.subr.bf16.mxu0 (!%p580_p0), %v817_v3  ;;  %v332_v4 = vsel (!%p580_p0), %vm327_vm1, %v704_v2, 0  ;;  %v335_v6 = vsel (!%p580_p0), %vm327_vm1, %v705_v5, 0  ;;  %622 = vmatprep.mubr.msk.bf16.mxu0 (!%p580_p0), %vm818_vm2, %v817_v3  ;;  %v338_v8 = vsel (!%p580_p0), %vm327_vm1, %v706_v7, 0  ;;  %v707_v9 = vld [vmem:[%s1025_s1 + $0x18] sm:$0xff] (!%p580_p0)   ;;  %v708_v11 = vld [vmem:[%s1025_s1 + $0x20] sm:$0xff] (!%p580_p0)  }
  0x22   : > { %607 = vmatpush3.bf16.xpose.msra.mxu0 (!%p580_p0), %v332_v4  ;;  %v341_v10 = vsel (!%p580_p0), %vm327_vm1, %v707_v9, 0  ;;  %v344_v12 = vsel (!%p580_p0), %vm327_vm1, %v708_v11, 0  ;;  %v709_v13 = vld [vmem:[%s1025_s1 + $0x28] sm:$0xff] (!%p580_p0)   ;;  %v710_v15 = vld [vmem:[%s1025_s1 + $0x30] sm:$0xff] (!%p580_p0)   ;;  %v711_v17 = vld [vmem:[%s1025_s1 + $0x38] sm:$0xff] (!%p580_p0)   ;;  %v397_v21 = vand.u32 (!%p580_p0), 127, %v396_v20 }
  0x23   : > { %608 = vmatprep.subr.bf16.mxu0 (!%p580_p0), %v817_v3  ;;  %v347_v14 = vsel (!%p580_p0), %vm327_vm1, %v709_v13, 0  ;;  %v350_v16 = vsel (!%p580_p0), %vm327_vm1, %v710_v15, 0  ;;  %v353_v18 = vsel (!%p580_p0), %vm327_vm1, %v711_v17, 0  ;;  %v263_v19 = vld [vmem:[%s922_s8] sm:$0xf] (!%p580_p0)  ;;  %v819_v29 = vmov (!%p580_p0), 0  }
  0x24   : > { %v581_v22 = vld [vmem:[%s1026_s2] ss:$0 sm:$0xff] (!%p580_p0)  ;;  %vm400_vm3 = vcmp.lt.s32.totalorder (!%p580_p0), %v397_v21, 50  ;;  %703 = vset.pattern.permute.xlu0 (!%p580_p0), %v819_v29  ;;  %vm425_vm4 = vcmask (!%p580_p0), 7168   ;;  %v409_v40 = vld [vmem:[#allocation3] sm:$0xff] (!%p580_p0) }
  0x25   : > { %v405_v30 = vld [vmem:[#allocation2] sm:$0xff] (!%p580_p0) }
  0x2a   : > { %609 = vmatpush3.bf16.xpose.msra.mxu0 %v335_v6 }
  0x2b   : > { %610 = vmatprep.subr.bf16.mxu0 %v817_v3 }
  0x32   : > { %611 = vmatpush3.bf16.xpose.msra.mxu0 %v338_v8 }
  0x33   : > { %612 = vmatprep.subr.bf16.mxu0 %v817_v3 }
  0x3a   : > { %613 = vmatpush3.bf16.xpose.msra.mxu0 %v341_v10 }
  0x3b   : > { %614 = vmatprep.subr.bf16.mxu0 %v817_v3 }
  0x42   : > { %615 = vmatpush3.bf16.xpose.msra.mxu0 %v344_v12 }
  0x43   : > { %616 = vmatprep.subr.bf16.mxu0 %v817_v3 }
  0x4a   : > { %617 = vmatpush3.bf16.xpose.msra.mxu0 %v347_v14 }
  0x4b   : > { %618 = vmatprep.subr.bf16.mxu0 %v817_v3 }
  0x52   : > { %619 = vmatpush3.bf16.xpose.msra.mxu0 %v350_v16 }
  0x53   : > { %620 = vmatprep.subr.bf16.mxu0 %v817_v3 }
  0x5a   : > { %621 = vmatpush3.bf16.xpose.msra.mxu0 %v353_v18 }
  0x61   : > { %623 = vmatmul.mubr.msk.bf16.vlgmr.msra.gmra.mrb[0].mxu0 %vm327_vm1, %v263_v19 }
 0x134   : > { %v389_v23 = vpop.f32.mrb[0].mxu0 }
 0x135   : > { %v390_v24 = vadd.f32 %v581_v22, %v389_v23  ;;  %v624_v25 = vpop.f32.mrb[1].mxu0 }
 0x136   : > { %v392_v26 = vpop.f32.mrb[2].mxu0 }
 0x137   : > { %v625_v27 = vpop.f32.mrb[3].mxu0  ;;  %v401_v28 = vsel %vm400_vm3, %v390_v24, -1e+30 }
 0x138   : > { %406 = vmax.xlane.f32.xlu0 %v401_v28  ;;  %404 = vst [vmem:[#allocation4] sm:$0xff] %v401_v28 }
 0x1c5   : > { %v407_v31 = vpop.xlane.xlu0 %406 }
 0x1c6   : > { %v408_v32 = vmax.f32 %v405_v30, %v407_v31 }
 0x1c8   : > { %v410_v33 = vsub.f32 %v405_v30, %v408_v32  ;;  %427 = vst.msk [vmem:[#allocation2] sm:$0xff] %vm425_vm4, %v408_v32  ;;  %416 = vperm.xlu0 %703, %v408_v32  }
 0x1ca   : > { %v411_v38 = vmul.f32 1.442695, %v410_v33 }
 0x1cf   : > { %v431_v47 = vld [vmem:[#allocation2] sm:$0xff] }
 0x247   : > { %v417_v34 = vpop.permute.xlu0 %416 }
 0x248   : > { %v419_v35 = vsub.f32 %v401_v28, %v417_v34 }
 0x24a   : > { %v420_v36 = vmul.f32 1.442695, %v419_v35 }
 0x24c   : > { %712 = vpow2.f32 %v420_v36 }
 0x24d   : > { %714 = vpow2.f32 %v411_v38 }
 0x256   : > { %v713_v37 = vpop.eup %712 }
 0x257   : > { %422 = vadd.xlane.f32.xlu1 %v713_v37  ;;  %v715_v39 = vpop.eup %714 }
 0x258   : > { %v413_v41 = vmul.f32 %v715_v39, %v409_v40 }
 0x2e4   : > { %v423_v42 = vpop.xlane.xlu1 %422 }
 0x2e5   : > { %v424_v43 = vadd.f32 %v423_v42, %v413_v41 }
 0x2e7   : > { %426 = vst.msk [vmem:[#allocation3] sm:$0xff] %vm425_vm4, %v424_v43 }
 0x2ee   : > { %v432_v44 = vld [vmem:[#allocation3] sm:$0xff] }
 0x2ef   : > { %716 = vlog2.f32 %v432_v44 }
 0x2f9   : > { %v717_v45 = vpop.eup %716 }
 0x2fa   : > { %v434_v46 = vmul.f32 0.6931472, %v717_v45 }
 0x2fc   : > { %v435_v48 = vadd.f32 %v434_v46, %v431_v47 }
 0x2fe   : > { %436 = vst.msk [vmem:[#allocation2] sm:$0xff] %vm425_vm4, %v435_v48 }
 0x2ff PF: > { %p591_p1 = scmp.ne.s32.totalorder %s797_s15, 1 }
 0x300   : > { %v820_v50 = vmov (!%p591_p1), 0   ;;  %v443_v51 = vld [vmem:[#allocation4] sm:$0xff] (!%p591_p1) }
 0x301   : > { %440 = sbr.rel (%p591_p1) target bundleno = 905 (0x389), region = 48  ;;  %718 = vset.pattern.permute.xlu0 (!%p591_p1), %v820_v50 }
 0x305   : > { %v444_v49 = vld [vmem:[#allocation2] sm:$0xff] (!%p591_p1) }
 0x306   : > { %447 = vperm.xlu0 (!%p591_p1), %718, %v444_v49  }
 0x385   : > { %v448_v52 = vpop.permute.xlu0 %447 }
 0x386   : > { %v450_v53 = vsub.f32 %v443_v51, %v448_v52 }
 0x388   : > { %451 = vst [vmem:[%s227_s9] sm:$0xff] %v450_v53 }
 0x389 PF: > { %s593_s8 = sshll.u32 %s801_s16, 7  ;;  %s468_s10 = sshll.u32 %s227_s9, 4  ;;  %s469_s10 = int_to_ptr.vmem [resolvable:$true] %s468_s10 }
 0x38a   : > { %s973_s15 = scalar_lea.hbm %s1027_s3, %s593_s8  ;;  %s453_s11 = scalar_lea.sflag [#allocation6], %s225_s29 }
 0x38b   : > { %s719_s20 = scalar_lea.vmem %s469_s10, 128  ;;  %s821_s21 = smov [#allocation5]  }
 0x38c   : > { %p720_p2 = scmp.ne.s32.totalorder %s469_s10, %s719_s20  ;;  %s723_s26 = sshll.u32 %s821_s21, 4  ;;  %s724_s26 = int_to_ptr.vmem [resolvable:$false] %s723_s26 }
 0x38d   : > { %s725_s27 = scalar_lea.vmem %s724_s26, 256  ;;  %p726_p6 = scmp.lt.s32.totalorder %s469_s10, %s724_s26 }
 0x38e   : > { %p721_p4 = pnand %p720_p2, %p891_p3  ;;  %p727_p7 = scmp.lt.s32.totalorder %s725_s27, %s719_s20 }
 0x390   : > { %p722_p5 = pneg %p721_p4  ;;  %p728_p8 = por %p727_p7, %p726_p6 }
 0x392   : > { %p729_p10 = pnand %p728_p8, %p722_p5 }
 0x394   : > { %732 = shalt.err (!%p729_p10)
}
 0x395   : > { %s733_s16 = scalar_lea.hbm %s973_s15, 128  ;;  %s737_s9 = scalar_lea.hbm %s1027_s3, 256 }
 0x396   : > { %p734_p11 = scmp.ne.s32.totalorder %s973_s15, %s733_s16  ;;  %p738_p0 = scmp.lt.u32.totalorder %s973_s15, %s1027_s3 }
 0x397   : > { %p739_p1 = scmp.lt.u32.totalorder %s737_s9, %s733_s16  ;;  %p741_p4 = scmp.lt.u32.totalorder %s733_s16, %s973_s15 }
 0x398   : > { %p735_p12 = pnand %p734_p11, %p891_p3 }
 0x399   : > { %p740_p2 = por %p739_p1, %p738_p0 }
 0x39a   : > { %p736_p13 = pneg %p735_p12 }
 0x39b   : > { %p742_p5 = por %p741_p4, %p740_p2 }
 0x39d   : > { %p743_p6 = pnand %p742_p5, %p736_p13 }
 0x39f   : > { %746 = shalt.err (!%p743_p6)
}
 0x3a0   : > { %626 = dma.vmem_to_hbm [thread:$0]  (%p891_p3), %s469_s10, 128, %s973_s15, %s453_s11  }
 0x3a1 PF: > { %p632_p7 = scmp.ge.s32.totalorder %s813_s19, 2  ;;  %s480_s8 = sand.u32 1, %s785_s12  }
 0x3a2   : > { %s481_s6 = scalar_lea.sflag [#allocation6], %s480_s8 }
 0x3a3   : > { %p629_p8 = pnand %p632_p7, %p901_p9 }
 0x3a5   : > { %780 = dma.done.wait (!%p629_p8), %s481_s6, 128  }
 0x3a6   : > { %782 = vsyncadd (!%p629_p8), %s481_s6, 4294967168  ;;  %s16_s19 = sadd.s32 1, %s813_s19   ;;  %s1030_s12 = smov %s789_s13 }
 0x3a7   : > { %p13_p10 = scmp.ge.s32.totalorder %s16_s19, 6   ;;  %s1031_s13 = smov %s793_s14 }
 0x3a8   : > { %s1032_s14 = smov %s909_s28  ;;  %s1033_s15 = smov %s805_s17 }
 0x3a9   : > { %s1034_s16 = smov %s809_s18  ;;  %s1035_s17 = smov %s1038_s22 }
 0x3aa   : > { %s1036_s18 = smov %s1042_s23  ;;  %15 = sbr.rel (!%p13_p10) target bundleno = 5 (0x5), region = 91 }
 0x3b1   :  { %486 = vsyncpa [#allocation6], 1 }
 0x3b2   :  { %488 = vsyncpa [#allocation6 + $0x1], 1 }

</bundles_post_ra>
